<compile_context>
chip_gen: v5e
topology: v5e:2x2
jax: 0.10.0
libtpu: 0.0.40
codegen_flags: <defaults>
</compile_context>

<pallas_src>
import functools
import math

import jax
import jax.numpy as jnp
from jax.experimental import pallas as pl
from jax.experimental.pallas import tpu as pltpu


def me_tcn_kernel(xm_ref, wsq_ref, bsq_ref, wc1_ref, bc1_ref,
                  wexp_ref, bexp_ref, keep_ref, out_ref):
    """One grid step processes R = G * n_segment frames (V already averaged).

    xm_ref  : (R, C)      per-frame V-averaged input rows (group aligned)
    wsq_ref : (C, Cr)     squeeze 1x1 conv weight with eval-BN folded in
    bsq_ref : (1, Cr)     folded squeeze bias
    wc1_ref : (Cr, Cr), bc1_ref : (1, Cr)      me_conv1
    wexp_ref: (Cr, Cout), bexp_ref: (1, Cout)  me_expand
    keep_ref: (R, 1)      1.0 everywhere except group-last rows (0.0)
    out_ref : (R, Cout)   sigmoid excitation per frame
    """
    xm = xm_ref[...]                                                  # (R, C)

    # squeeze (+ folded BN) and conv1 as two batched channel matmuls
    y = jnp.dot(xm, wsq_ref[...],
                preferred_element_type=jnp.float32) + bsq_ref[...]   # (R, Cr)
    z = jnp.dot(y, wc1_ref[...],
                preferred_element_type=jnp.float32) + bc1_ref[...]   # (R, Cr)

    # Row shift z[r] <- z[r+1] as a small MXU matmul with a shift matrix built
    # from iotas.  The last row of the block is a group-last row (R is a
    # multiple of n_segment), so its missing successor is irrelevant: `keep`
    # zeroes it below.
    r = xm.shape[0]
    ri = jax.lax.broadcasted_iota(jnp.int32, (r, r), 0)
    ci = jax.lax.broadcasted_iota(jnp.int32, (r, r), 1)
    shift = jnp.where(ci == ri + 1, 1.0, 0.0).astype(jnp.float32)     # (R, R)
    z_next = jnp.dot(shift, z, preferred_element_type=jnp.float32)    # (R, Cr)

    # motion difference, zero at the last frame of every segment group
    motion = (z_next - y) * keep_ref[...]                             # (R, Cr)

    # expand + sigmoid, single lane-dense store
    o = jnp.dot(motion, wexp_ref[...],
                preferred_element_type=jnp.float32) + bexp_ref[...]   # (R, Cout)
    out_ref[...] = jax.nn.sigmoid(o).astype(out_ref.dtype)


def _choose_block_rows(rows, n_segment):
    # Blocks must be a multiple of n_segment (group alignment) and of 8
    # (f32 sublane tile).  Target ~512 rows/block so DMAs are amortized.
    unit = 8 * n_segment // math.gcd(8, n_segment)
    if rows <= 512:
        return -(-rows // unit) * unit
    return max(unit, (512 // unit) * unit)


@functools.partial(jax.jit, static_argnames=("n_segment",))
def motion_excitation_tcn(x, params, n_segment=3):
    """x: (N, C, T, V) float32 -> (N, C_out, T, 1) float32 (PyTorch layout)."""
    n, c, t, v = x.shape
    nt = n * t
    assert nt % n_segment == 0
    cr = params["w_sq"].shape[0]
    c_out = params["w_exp"].shape[0]
    eps = 1e-5

    # Fold eval-mode BN and the squeeze bias into the squeeze weight.
    bn_scale = params["gamma"] / jnp.sqrt(params["running_var"] + eps)
    bn_shift = params["beta"] - params["running_mean"] * bn_scale
    w_sq = params["w_sq"].T * bn_scale[None, :]                 # (C, Cr) folded
    b_sq = (params["b_sq"] * bn_scale + bn_shift).reshape(1, cr)
    w_c1 = params["w_c1"].T                                     # (Cr, Cr)
    b_c1 = params["b_c1"].reshape(1, cr)
    w_exp = params["w_exp"].T                                   # (Cr, Cout)
    b_exp = params["b_exp"].reshape(1, c_out)

    # 1x1 convs & eval BN are per-channel affine -> the V average commutes
    # with them.  Pool over V on the original NCTV layout (V is the lane dim),
    # then transpose only the small (N, T, C) result.
    xm = jnp.mean(x, axis=3)                                    # (N, C, T)
    xm = jnp.transpose(xm, (0, 2, 1)).reshape(nt, c)            # (nt, C)

    block_rows = _choose_block_rows(nt, n_segment)
    rows_padded = -(-nt // block_rows) * block_rows
    num_blocks = rows_padded // block_rows
    if rows_padded != nt:
        xm = jnp.pad(xm, ((0, rows_padded - nt), (0, 0)))

    # 1.0 except on group-last rows (block starts are group aligned, so the
    # same pattern applies to every block).
    keep = (jnp.arange(block_rows) % n_segment != (n_segment - 1))
    keep = keep.astype(jnp.float32).reshape(block_rows, 1)

    out = pl.pallas_call(
        me_tcn_kernel,
        out_shape=jax.ShapeDtypeStruct((rows_padded, c_out), jnp.float32),
        grid=(num_blocks,),
        in_specs=[
            pl.BlockSpec((block_rows, c), lambda i: (i, 0)),
            pl.BlockSpec((c, cr), lambda i: (0, 0)),
            pl.BlockSpec((1, cr), lambda i: (0, 0)),
            pl.BlockSpec((cr, cr), lambda i: (0, 0)),
            pl.BlockSpec((1, cr), lambda i: (0, 0)),
            pl.BlockSpec((cr, c_out), lambda i: (0, 0)),
            pl.BlockSpec((1, c_out), lambda i: (0, 0)),
            pl.BlockSpec((block_rows, 1), lambda i: (0, 0)),
        ],
        out_specs=pl.BlockSpec((block_rows, c_out), lambda i: (i, 0)),
        compiler_params=pltpu.CompilerParams(
            dimension_semantics=("parallel",)),
    )(xm, w_sq, b_sq, w_c1, b_c1, w_exp, b_exp, keep)

    # (rows, C_out) -> (N, T, C_out) -> (N, C_out, T, 1)
    out = out[:nt].reshape(n, t, c_out)
    out = jnp.transpose(out, (0, 2, 1))[..., None]
    return out


def reference_forward(x, params, n_segment=3):
    """Pure-JAX mirror of the PyTorch forward (eval-mode BN) for checking."""
    n, c, t, v = x.shape
    n_batch = n * t // n_segment
    eps = 1e-5

    def conv1x1(inp, w, b):  # inp (N,Ci,T,V), w (Co,Ci), b (Co,)
        return jnp.einsum('nctv,oc->notv', inp, w) + b[None, :, None, None]

    y = conv1x1(x, params["w_sq"], params["b_sq"])
    y = (y - params["running_mean"][None, :, None, None]) / jnp.sqrt(
        params["running_var"] + eps)[None, :, None, None]
    y = y * params["gamma"][None, :, None, None] + params["beta"][None, :, None, None]
    cr = y.shape[1]

    y_flat = jnp.transpose(y, (0, 2, 1, 3)).reshape(n * t, cr, v)
    x_plus0 = y_flat.reshape(n_batch, n_segment, cr, v)[:, :n_segment - 1]

    z = conv1x1(y, params["w_c1"], params["b_c1"])
    z_flat = jnp.transpose(z, (0, 2, 1, 3)).reshape(n * t, cr, v)
    x_plus1 = z_flat.reshape(n_batch, n_segment, cr, v)[:, 1:]

    x_me = x_plus1 - x_plus0
    x_me = jnp.pad(x_me, ((0, 0), (0, 1), (0, 0), (0, 0)))
    x_me = jnp.transpose(x_me.reshape(n, t, cr, v), (0, 2, 1, 3))
    x_me = jnp.mean(x_me, axis=-1, keepdims=True)
    x_me = conv1x1(x_me, params["w_exp"], params["b_exp"])
    return jax.nn.sigmoid(x_me)


def init_params(key, in_channels, out_channels):
    cr = in_channels // 16
    ks = jax.random.split(key, 10)
    return dict(
        w_sq=0.1 * jax.random.normal(ks[0], (cr, in_channels), jnp.float32),
        b_sq=0.1 * jax.random.normal(ks[1], (cr,), jnp.float32),
        gamma=1.0 + 0.1 * jax.random.normal(ks[2], (cr,), jnp.float32),
        beta=0.1 * jax.random.normal(ks[3], (cr,), jnp.float32),
        running_mean=0.1 * jax.random.normal(ks[4], (cr,), jnp.float32),
        running_var=jnp.abs(1.0 + 0.1 * jax.random.normal(ks[5], (cr,), jnp.float32)),
        w_c1=0.1 * jax.random.normal(ks[6], (cr, cr), jnp.float32),
        b_c1=0.1 * jax.random.normal(ks[7], (cr,), jnp.float32),
        w_exp=0.1 * jax.random.normal(ks[8], (out_channels, cr), jnp.float32),
        b_exp=0.1 * jax.random.normal(ks[9], (out_channels,), jnp.float32),
    )


if __name__ == "__main__":
    key = jax.random.PRNGKey(0)
    kx, kp = jax.random.split(key)

    # small shapes consistent with the module: in_channels must be >= 16,
    # and N*T must be divisible by n_segment (=3).
    n, c_in, c_out, t, v = 2, 64, 64, 6, 16
    x = jax.random.normal(kx, (n, c_in, t, v), jnp.float32)
    params = init_params(kp, c_in, c_out)

    out = motion_excitation_tcn(x, params, n_segment=3)
    out = jax.block_until_ready(out)

    ref = reference_forward(x, params, n_segment=3)
    assert out.shape == (n, c_out, t, 1), out.shape
    max_err = float(jnp.max(jnp.abs(out - ref)))
    assert jnp.allclose(out, ref, atol=1e-5, rtol=1e-4), max_err

    print("KERNEL_OK")
</pallas_src>

<mosaic_0001>
module attributes {stable_mosaic.version = 11 : i64} {
  func.func @me_tcn_kernel(%arg0: i32, %arg1: memref<24x64xf32, #tpu.memory_space<vmem>>, %arg2: memref<64x4xf32, #tpu.memory_space<vmem>>, %arg3: memref<1x4xf32, #tpu.memory_space<vmem>>, %arg4: memref<4x4xf32, #tpu.memory_space<vmem>>, %arg5: memref<1x4xf32, #tpu.memory_space<vmem>>, %arg6: memref<4x64xf32, #tpu.memory_space<vmem>>, %arg7: memref<1x64xf32, #tpu.memory_space<vmem>>, %arg8: memref<24x1xf32, #tpu.memory_space<vmem>>, %arg9: memref<24x64xf32, #tpu.memory_space<vmem>>) attributes {dimension_semantics = [#tpu.dimension_semantics<parallel>], iteration_bounds = array<i64: 1>, scalar_prefetch = 0 : i64, scratch_operands = 0 : i64, tpu.core_type = #tpu.core_type<tc>, window_params = [{transform_indices = @transform_0, window_bounds = array<i64: 24, 64>}, {pipeline_mode = #tpu.pipeline_mode<synchronous>, transform_indices = @transform_1, window_bounds = array<i64: 64, 4>}, {pipeline_mode = #tpu.pipeline_mode<synchronous>, transform_indices = @transform_2, window_bounds = array<i64: 1, 4>}, {pipeline_mode = #tpu.pipeline_mode<synchronous>, transform_indices = @transform_3, window_bounds = array<i64: 4, 4>}, {pipeline_mode = #tpu.pipeline_mode<synchronous>, transform_indices = @transform_4, window_bounds = array<i64: 1, 4>}, {pipeline_mode = #tpu.pipeline_mode<synchronous>, transform_indices = @transform_5, window_bounds = array<i64: 4, 64>}, {pipeline_mode = #tpu.pipeline_mode<synchronous>, transform_indices = @transform_6, window_bounds = array<i64: 1, 64>}, {pipeline_mode = #tpu.pipeline_mode<synchronous>, transform_indices = @transform_7, window_bounds = array<i64: 24, 1>}, {transform_indices = @transform_8, window_bounds = array<i64: 24, 64>}]} {
    %c0 = arith.constant 0 : index
    %c0_0 = arith.constant 0 : index
    %0 = vector.load %arg1[%c0, %c0_0] : memref<24x64xf32, #tpu.memory_space<vmem>>, vector<24x64xf32>
    %c0_1 = arith.constant 0 : index
    %c0_2 = arith.constant 0 : index
    %1 = vector.load %arg2[%c0_1, %c0_2] : memref<64x4xf32, #tpu.memory_space<vmem>>, vector<64x4xf32>
    %cst = arith.constant dense<0.000000e+00> : vector<24x4xf32>
    %2 = tpu.matmul %0, %1, %cst {dimension_numbers = #tpu.dot_dimension_numbers<[1], [0], [0], [1], [0, 0, 1, 1], [], []>} : vector<24x64xf32>, vector<64x4xf32>, vector<24x4xf32> -> vector<24x4xf32>
    %c0_3 = arith.constant 0 : index
    %c0_4 = arith.constant 0 : index
    %3 = vector.load %arg3[%c0_3, %c0_4] : memref<1x4xf32, #tpu.memory_space<vmem>>, vector<1x4xf32>
    %4 = vector.broadcast %3 : vector<1x4xf32> to vector<24x4xf32>
    %5 = arith.addf %2, %4 : vector<24x4xf32>
    %c0_5 = arith.constant 0 : index
    %c0_6 = arith.constant 0 : index
    %6 = vector.load %arg4[%c0_5, %c0_6] : memref<4x4xf32, #tpu.memory_space<vmem>>, vector<4x4xf32>
    %cst_7 = arith.constant dense<0.000000e+00> : vector<24x4xf32>
    %7 = tpu.matmul %5, %6, %cst_7 {dimension_numbers = #tpu.dot_dimension_numbers<[1], [0], [0], [1], [0, 0, 1, 1], [], []>} : vector<24x4xf32>, vector<4x4xf32>, vector<24x4xf32> -> vector<24x4xf32>
    %c0_8 = arith.constant 0 : index
    %c0_9 = arith.constant 0 : index
    %8 = vector.load %arg5[%c0_8, %c0_9] : memref<1x4xf32, #tpu.memory_space<vmem>>, vector<1x4xf32>
    %9 = vector.broadcast %8 : vector<1x4xf32> to vector<24x4xf32>
    %10 = arith.addf %7, %9 : vector<24x4xf32>
    %11 = tpu.iota {dimensions = array<i32: 0>} : vector<24x24xi32>
    %12 = tpu.iota {dimensions = array<i32: 1>} : vector<24x24xi32>
    %c1_i32 = arith.constant 1 : i32
    %13 = vector.broadcast %c1_i32 : i32 to vector<24x24xi32>
    %14 = arith.addi %11, %13 : vector<24x24xi32>
    %15 = arith.cmpi eq, %12, %14 : vector<24x24xi32>
    %cst_10 = arith.constant 1.000000e+00 : f32
    %cst_11 = arith.constant 0.000000e+00 : f32
    %16 = vector.broadcast %cst_10 : f32 to vector<24x24xf32>
    %17 = vector.broadcast %cst_11 : f32 to vector<24x24xf32>
    %18 = arith.select %15, %16, %17 : vector<24x24xi1>, vector<24x24xf32>
    %cst_12 = arith.constant dense<0.000000e+00> : vector<24x4xf32>
    %19 = tpu.matmul %18, %10, %cst_12 {dimension_numbers = #tpu.dot_dimension_numbers<[1], [0], [0], [1], [0, 0, 1, 1], [], []>} : vector<24x24xf32>, vector<24x4xf32>, vector<24x4xf32> -> vector<24x4xf32>
    %20 = arith.subf %19, %5 : vector<24x4xf32>
    %c0_13 = arith.constant 0 : index
    %c0_14 = arith.constant 0 : index
    %21 = vector.load %arg8[%c0_13, %c0_14] : memref<24x1xf32, #tpu.memory_space<vmem>>, vector<24x1xf32>
    %22 = vector.broadcast %21 : vector<24x1xf32> to vector<24x4xf32>
    %23 = arith.mulf %20, %22 : vector<24x4xf32>
    %c0_15 = arith.constant 0 : index
    %c0_16 = arith.constant 0 : index
    %24 = vector.load %arg6[%c0_15, %c0_16] : memref<4x64xf32, #tpu.memory_space<vmem>>, vector<4x64xf32>
    %cst_17 = arith.constant dense<0.000000e+00> : vector<24x64xf32>
    %25 = tpu.matmul %23, %24, %cst_17 {dimension_numbers = #tpu.dot_dimension_numbers<[1], [0], [0], [1], [0, 0, 1, 1], [], []>} : vector<24x4xf32>, vector<4x64xf32>, vector<24x64xf32> -> vector<24x64xf32>
    %c0_18 = arith.constant 0 : index
    %c0_19 = arith.constant 0 : index
    %26 = vector.load %arg7[%c0_18, %c0_19] : memref<1x64xf32, #tpu.memory_space<vmem>>, vector<1x64xf32>
    %27 = vector.broadcast %26 : vector<1x64xf32> to vector<24x64xf32>
    %28 = arith.addf %25, %27 : vector<24x64xf32>
    %29 = arith.negf %28 : vector<24x64xf32>
    %30 = math.exp %29 : vector<24x64xf32>
    %cst_20 = arith.constant 1.000000e+00 : f32
    %31 = vector.broadcast %cst_20 : f32 to vector<24x64xf32>
    %32 = arith.addf %31, %30 : vector<24x64xf32>
    %33 = arith.divf %31, %32 : vector<24x64xf32>
    %c0_21 = arith.constant 0 : index
    %c0_22 = arith.constant 0 : index
    %34 = vector.load %arg9[%c0_21, %c0_22] : memref<24x64xf32, #tpu.memory_space<vmem>>, vector<24x64xf32>
    tpu.vector_store %arg9[%c0_21, %c0_22], %33 {strides = array<i32>} : memref<24x64xf32, #tpu.memory_space<vmem>>, vector<24x64xf32>,
    return
  }
  func.func @transform_0(%arg0: i32) -> (i32, i32) {
    %c0_i32 = arith.constant 0 : i32
    %c0_i32_0 = arith.constant 0 : i32
    return %arg0, %c0_i32 : i32, i32
  }
  func.func @transform_1(%arg0: i32) -> (i32, i32) {
    %c0_i32 = arith.constant 0 : i32
    %c0_i32_0 = arith.constant 0 : i32
    %c0_i32_1 = arith.constant 0 : i32
    return %c0_i32, %c0_i32_0 : i32, i32
  }
  func.func @transform_2(%arg0: i32) -> (i32, i32) {
    %c0_i32 = arith.constant 0 : i32
    %c0_i32_0 = arith.constant 0 : i32
    %c0_i32_1 = arith.constant 0 : i32
    return %c0_i32, %c0_i32_0 : i32, i32
  }
  func.func @transform_3(%arg0: i32) -> (i32, i32) {
    %c0_i32 = arith.constant 0 : i32
    %c0_i32_0 = arith.constant 0 : i32
    %c0_i32_1 = arith.constant 0 : i32
    return %c0_i32, %c0_i32_0 : i32, i32
  }
  func.func @transform_4(%arg0: i32) -> (i32, i32) {
    %c0_i32 = arith.constant 0 : i32
    %c0_i32_0 = arith.constant 0 : i32
    %c0_i32_1 = arith.constant 0 : i32
    return %c0_i32, %c0_i32_0 : i32, i32
  }
  func.func @transform_5(%arg0: i32) -> (i32, i32) {
    %c0_i32 = arith.constant 0 : i32
    %c0_i32_0 = arith.constant 0 : i32
    %c0_i32_1 = arith.constant 0 : i32
    return %c0_i32, %c0_i32_0 : i32, i32
  }
  func.func @transform_6(%arg0: i32) -> (i32, i32) {
    %c0_i32 = arith.constant 0 : i32
    %c0_i32_0 = arith.constant 0 : i32
    %c0_i32_1 = arith.constant 0 : i32
    return %c0_i32, %c0_i32_0 : i32, i32
  }
  func.func @transform_7(%arg0: i32) -> (i32, i32) {
    %c0_i32 = arith.constant 0 : i32
    %c0_i32_0 = arith.constant 0 : i32
    %c0_i32_1 = arith.constant 0 : i32
    return %c0_i32, %c0_i32_0 : i32, i32
  }
  func.func @transform_8(%arg0: i32) -> (i32, i32) {
    %c0_i32 = arith.constant 0 : i32
    %c0_i32_0 = arith.constant 0 : i32
    return %arg0, %c0_i32 : i32, i32
  }
}

</mosaic_0001>

<bundles_post_ra>
// kernel: motion_excitation_tcn.1
= control target key start
LH: loop header
LB: loop body
LE: loop exit
PB: predicated region body
PF: predicated region fallthrough
CT: control target
= control target key end

     0   :  { %vm44_vm0 = vcmask 523264   ;;  %vm95_vm1 = vcmask 1043456   ;;  %vm85_vm2 = vcmask 31744   ;;  %v343_v21 = vmov 0   ;;  %s470_s1 = inlined_call_operand.vmem [shape: f32[64,4], index: 1, kind: input, shape index: {}]   ;;  %s471_s2 = inlined_call_operand.vmem [shape: f32[1,4], index: 2, kind: input, shape index: {}]   ;;  %s472_s0 = inlined_call_operand.vmem [shape: f32[24,64], index: 0, kind: input, shape index: {}]   ;;  %s473_s4 = inlined_call_operand.vmem [shape: f32[1,4], index: 4, kind: input, shape index: {}]   ;;  %s474_s3 = inlined_call_operand.vmem [shape: f32[4,4], index: 3, kind: input, shape index: {}]   ;;  %s475_s7 = inlined_call_operand.vmem [shape: f32[24,1], index: 7, kind: input, shape index: {}]   ;;  %s476_s6 = inlined_call_operand.vmem [shape: f32[1,64], index: 6, kind: input, shape index: {}]   ;;  %s477_s5 = inlined_call_operand.vmem [shape: f32[4,64], index: 5, kind: input, shape index: {}]   ;;  %s478_s8 = inlined_call_operand.vmem [shape: f32[24,64], index: 8, kind: output, shape index: {}]  }
   0x1   :  { %v39_v0 = vld [vmem:[%s470_s1 + $0x38] sm:$0xff]  ;;  %v38_v1 = vld [vmem:[%s470_s1 + $0x30] sm:$0xff]  ;;  %v37_v2 = vld [vmem:[%s470_s1 + $0x28] sm:$0xff]  ;;  %326 = vset.pattern.permute.xlu0 %v343_v21  ;;  %327 = vset.pattern.permute.xlu1 %v343_v21  ;;  %v125_v22 = vlaneseq  ;;  %v344_v35 = vmov 0.0   ;;  %vm140_vm4 = vcmask 195584  }
   0x2   :  { %62 = vmatpush.msra.mxu0 %v39_v0  ;;  %v36_v3 = vld [vmem:[%s470_s1 + $0x20] sm:$0xff]  ;;  %v35_v4 = vld [vmem:[%s470_s1 + $0x18] sm:$0xff]  ;;  %v34_v5 = vld [vmem:[%s470_s1 + $0x10] sm:$0xff] }
   0x3   :  { %v33_v6 = vld [vmem:[%s470_s1 + $0x8] sm:$0xff]  ;;  %v32_v7 = vld [vmem:[%s470_s1] sm:$0xff]  ;;  %v31_v10 = vld [vmem:[%s472_s0 + $0x10] sm:$0xff]  ;;  %v126_v26 = vshrl.u32 %v125_v22, 7  ;;  %v130_v27 = vand.u32 127, %v125_v22 }
   0x4   :  { %63 = vmatpush.msra.mxu0 %v38_v1  ;;  %v29_v8 = vld [vmem:[%s472_s0] sm:$0xff]  ;;  %v30_v9 = vld [vmem:[%s472_s0 + $0x8] sm:$0xff]  ;;  %v181_v25 = vld [vmem:[%s475_s7 + $0x10] sm:$0xff] }
   0x5   :  { %v80_v11 = vld [vmem:[%s474_s3] sm:$0xf]  ;;  %v180_v24 = vld [vmem:[%s475_s7 + $0x8] sm:$0xff]  ;;  %194 = vperm.xlu1 %327, %v181_v25   ;;  %v131_v28 = vadd.s32 1, %v126_v26  ;;  %v127_v32 = vadd.s32 8, %v126_v26  ;;  %v128_v38 = vadd.s32 16, %v126_v26 }
   0x6   :  { %64 = vmatpush.msra.mxu0 %v37_v2  ;;  %310 = vmatpush.msk.msra.mxu1 %vm95_vm1, %v80_v11  ;;  %v328_v12 = vld [vmem:[%s471_s2] ss:$0 sm:$0xff] }
   0x7   :  { %v179_v20 = vld [vmem:[%s475_s7] sm:$0xff]  ;;  %vm134_vm3 = vcmp.eq.s32.totalorder %v130_v27, %v131_v28  ;;  %v132_v37 = vadd.s32 1, %v127_v32  ;;  %v133_v40 = vadd.s32 1, %v128_v38 }
   0x8   :  { %65 = vmatpush.msra.mxu0 %v36_v3  ;;  %184 = vperm.xlu0 %326, %v179_v20   ;;  %v329_v29 = vld [vmem:[%s473_s4] ss:$0 sm:$0xff]  ;;  %v137_v36 = vsel %vm134_vm3, 1.0, %v344_v35 }
   0x9   :  { %vm135_vm5 = vcmp.eq.s32.totalorder %v130_v27, %v132_v37  ;;  %vm136_vm6 = vcmp.eq.s32.totalorder %v130_v27, %v133_v40  ;;  %v200_v42 = vld [vmem:[%s477_s5] sm:$0xf] }
   0xa   :  { %66 = vmatpush.msra.mxu0 %v35_v4  ;;  %v138_v39 = vsel %vm135_vm5, 1.0, %v344_v35  ;;  %v139_v41 = vsel %vm136_vm6, 1.0, %v344_v35  ;;  %317 = vmatpush.msk.msra.mxu3 %vm95_vm1, %v200_v42  ;;  %v330_v55 = vld [vmem:[%s476_s6] ss:$0 sm:$0xff] }
   0xc   :  { %67 = vmatpush.msra.mxu0 %v34_v5 }
   0xe   :  { %68 = vmatpush.msra.mxu0 %v33_v6 }
  0x10   :  { %69 = vmatpush.msra.mxu0 %v32_v7  ;;  %189 = vperm.xlu0 %326, %v180_v24  }
  0x11   :  { %307 = vmatmul.msk.f32.vlgmr.msra.gmra.mxu0 %vm44_vm0, %v29_v8 }
  0x19   :  { %308 = vmatmul.msk.f32.gmra.mxu0 %vm44_vm0, %v30_v9 }
  0x21   :  { %309 = vmatmul.msk.f32.gmra.mxu0 %vm44_vm0, %v31_v10 }
  0x77   :  { %v195_v52 = vpop.permute.xlu1 %194 }
  0x7a   :  { %v185_v43 = vpop.permute.xlu0 %184 }
  0x82   :  { %v190_v49 = vpop.permute.xlu0 %189 }
  0x8e   :  { %v71_v13 = vpop.f32.mrf.mxu0 }
  0x8f   :  { %v72_v14 = vadd.f32 %v328_v12, %v71_v13 }
  0x91   :  { %311 = vmatmul.msk.f32.vlgmr.msra.gmra.mxu1 %vm85_vm2, %v72_v14 }
  0x96   :  { %v74_v15 = vpop.f32.mrf.mxu0 }
  0x97   :  { %v75_v16 = vadd.f32 %v328_v12, %v74_v15 }
  0x99   :  { %312 = vmatmul.msk.f32.gmra.mxu1 %vm85_vm2, %v75_v16 }
  0x9e   :  { %v77_v17 = vpop.f32.mrf.mxu0 }
  0x9f   :  { %v78_v18 = vadd.f32 %v328_v12, %v77_v17 }
  0xa1   :  { %313 = vmatmul.msk.f32.gmra.mxu1 %vm85_vm2, %v78_v18 }
 0x10e   :  { %v116_v19 = vpop.f32.mrf.mxu1 }
 0x10f   :  { %v117_v34 = vadd.f32 %v329_v29, %v116_v19 }
 0x116   :  { %v119_v23 = vpop.f32.mrf.mxu1 }
 0x117   :  { %v120_v33 = vadd.f32 %v329_v29, %v119_v23 }
 0x11e   :  { %v122_v30 = vpop.f32.mrf.mxu1 }
 0x11f   :  { %v123_v31 = vadd.f32 %v329_v29, %v122_v30 }
 0x121   :  { %163 = vmatpush.msra.mxu2 %v123_v31 }
 0x123   :  { %164 = vmatpush.msra.mxu2 %v120_v33 }
 0x125   :  { %165 = vmatpush.msra.mxu2 %v117_v34 }
 0x126   :  { %314 = vmatmul.msk.f32.vlgmr.msra.gmra.mxu2 %vm140_vm4, %v137_v36 }
 0x12e   :  { %315 = vmatmul.msk.f32.gmra.mxu2 %vm140_vm4, %v138_v39 }
 0x136   :  { %316 = vmatmul.msk.f32.gmra.mxu2 %vm140_vm4, %v139_v41 }
 0x1a9   :  { %v167_v44 = vpop.f32.mrf.mxu2 }
 0x1aa   :  { %v176_v45 = vsub.f32 %v167_v44, %v72_v14 }
 0x1ac   :  { %v197_v46 = vmul.f32 %v185_v43, %v176_v45 }
 0x1ae   :  { %318 = vmatmul.msk.f32.vlgmr.msra.gmra.mxu3 %vm85_vm2, %v197_v46 }
 0x1b1   :  { %v170_v47 = vpop.f32.mrf.mxu2 }
 0x1b2   :  { %v177_v48 = vsub.f32 %v170_v47, %v75_v16 }
 0x1b4   :  { %v198_v50 = vmul.f32 %v190_v49, %v177_v48 }
 0x1b6   :  { %319 = vmatmul.msk.f32.gmra.mxu3 %vm85_vm2, %v198_v50 }
 0x1b9   :  { %v173_v51 = vpop.f32.mrf.mxu2 }
 0x1ba   :  { %v178_v53 = vsub.f32 %v173_v51, %v78_v18 }
 0x1bc   :  { %v199_v54 = vmul.f32 %v195_v52, %v178_v53 }
 0x1be   :  { %320 = vmatmul.msk.f32.gmra.mxu3 %vm85_vm2, %v199_v54 }
 0x231   :  { %v234_v56 = vpop.f32.mrf.mxu3 }
 0x232   :  { %v235_v57 = vadd.f32 %v330_v55, %v234_v56 }
 0x234   :  { %v321_v58 = vmul.f32 -1.442695, %v235_v57 }
 0x236   :  { %331 = vpow2.f32 %v321_v58 }
 0x239   :  { %v237_v59 = vpop.f32.mrf.mxu3 }
 0x23a   :  { %v238_v60 = vadd.f32 %v330_v55, %v237_v59 }
 0x23c   :  { %v332_v61 = vpop.eup %331  ;;  %v322_v62 = vmul.f32 -1.442695, %v238_v60 }
 0x23d   :  { %v252_v63 = vadd.f32 1.0, %v332_v61 }
 0x23e   :  { %333 = vpow2.f32 %v322_v62 }
 0x23f   :  { %335 = vrcp.f32 %v252_v63  ;;  %v266_v8 = vand.u32 2147483648, %v252_v63  ;;  %v264_v10 = vand.u32 2147483647, %v252_v63  ;;  %vm260_vm8 = vweird.f32 %v252_v63 }
 0x241   :  { %v240_v0 = vpop.f32.mrf.mxu3  ;;  %v267_v14 = vor.u32 1.1754944e-38, %v266_v8  ;;  %vm265_vm10 = vcmp.eq.f32.partialorder %v264_v10, 8.507059e+37 }
 0x242   :  { %v241_v1 = vadd.f32 %v330_v55, %v240_v0 }
 0x244   :  { %v334_v2 = vpop.eup %333  ;;  %v323_v3 = vmul.f32 -1.442695, %v241_v1 }
 0x245   :  { %v336_v4 = vpop.eup %335  ;;  %v253_v5 = vadd.f32 1.0, %v334_v2 }
 0x246   :  { %v256_v6 = vmul.f32 %v336_v4, %v252_v63  ;;  %337 = vpow2.f32 %v323_v3  ;;  %vm261_vm7 = vweird.f32 %v336_v4 }
 0x247   :  { %339 = vrcp.f32 %v253_v5  ;;  %vm262_vm9 = vmor %vm260_vm8, %vm261_vm7  ;;  %v281_v20 = vand.u32 2147483648, %v253_v5  ;;  %v279_v22 = vand.u32 2147483647, %v253_v5  ;;  %vm275_vm12 = vweird.f32 %v253_v5 }
 0x248   :  { %v257_v7 = vsub.f32 1.0, %v256_v6 }
 0x249   :  { %v282_v25 = vor.u32 1.1754944e-38, %v281_v20  ;;  %vm280_vm14 = vcmp.eq.f32.partialorder %v279_v22, 8.507059e+37 }
 0x24a   :  { %v258_v9 = vmul.f32 %v336_v4, %v257_v7 }
 0x24c   :  { %v338_v11 = vpop.eup %337  ;;  %v259_v12 = vadd.f32 %v336_v4, %v258_v9 }
 0x24d   :  { %v340_v13 = vpop.eup %339  ;;  %v254_v15 = vadd.f32 1.0, %v338_v11 }
 0x24e   :  { %v263_v16 = vsel %vm262_vm9, %v336_v4, %v259_v12  ;;  %v271_v17 = vmul.f32 %v340_v13, %v253_v5  ;;  %vm276_vm11 = vweird.f32 %v340_v13 }
 0x24f   :  { %v268_v18 = vsel %vm265_vm10, %v267_v14, %v263_v16  ;;  %341 = vrcp.f32 %v254_v15  ;;  %vm277_vm13 = vmor %vm275_vm12, %vm276_vm11  ;;  %v296_v30 = vand.u32 2147483648, %v254_v15  ;;  %v294_v32 = vand.u32 2147483647, %v254_v15 }
 0x250   :  { %300 = vst.msk [vmem:[%s478_s8] sm:$0xff] %vm44_vm0, %v268_v18  ;;  %v272_v19 = vsub.f32 1.0, %v271_v17  ;;  %vm290_vm1 = vweird.f32 %v254_v15 }
 0x251   :  { %v297_v34 = vor.u32 1.1754944e-38, %v296_v30  ;;  %vm295_vm3 = vcmp.eq.f32.partialorder %v294_v32, 8.507059e+37 }
 0x252   :  { %v273_v21 = vmul.f32 %v340_v13, %v272_v19 }
 0x254   :  { %v274_v23 = vadd.f32 %v340_v13, %v273_v21 }
 0x255   :  { %v342_v24 = vpop.eup %341 }
 0x256   :  { %v278_v26 = vsel %vm277_vm13, %v340_v13, %v274_v23  ;;  %v286_v27 = vmul.f32 %v342_v24, %v254_v15  ;;  %vm291_vm15 = vweird.f32 %v342_v24 }
 0x257   :  { %v283_v28 = vsel %vm280_vm14, %v282_v25, %v278_v26  ;;  %vm292_vm2 = vmor %vm290_vm1, %vm291_vm15 }
 0x258   :  { %301 = vst.msk [vmem:[%s478_s8 + $0x8] sm:$0xff] %vm44_vm0, %v283_v28  ;;  %v287_v29 = vsub.f32 1.0, %v286_v27 }
 0x25a   :  { %v288_v31 = vmul.f32 %v342_v24, %v287_v29 }
 0x25c   :  { %v289_v33 = vadd.f32 %v342_v24, %v288_v31 }
 0x25e   :  { %v293_v35 = vsel %vm292_vm2, %v342_v24, %v289_v33 }
 0x25f   :  { %v298_v36 = vsel %vm295_vm3, %v297_v34, %v293_v35 }
 0x260   :  { %302 = vst.msk [vmem:[%s478_s8 + $0x10] sm:$0xff] %vm44_vm0, %v298_v36 }

</bundles_post_ra>
